<compile_context>
chip_gen: v6e
topology: v6e:2x2x1
jax: 0.10.0
libtpu: 0.0.40
codegen_flags: <defaults>
</compile_context>

<pallas_src>
import jax
import jax.numpy as jnp
from jax import lax
from jax.experimental import pallas as pl
from jax.experimental.pallas import tpu as pltpu


# ----------------------------- Pallas kernel ------------------------------- #
def make_dense_block_kernel(*, num_layers, L, K, c_in, c_out, c_b, mxu_dtype):
    """Build the fused DenseBlock kernel.

    Kernel ref order:
      x_ref (Cin, B*L),
      per layer: s1 (Cin_l,1), t1 (Cin_l,1), w1 (Cb,Cin_l), b1 (Cb,1),
                 s2 (Cb,1),    t2 (Cb,1),    w2r (Cout,K*Cb), b2 (Cout,1),
      o_ref (C_total, B*L),
      acc_ref (C_total, B*L) f32 VMEM scratch.
    """
    left = (K - 1) // 2   # PyTorch padding='same' (dilation=1)
    n_per_layer = 8

    def kernel(*refs):
        x_ref = refs[0]
        o_ref = refs[1 + n_per_layer * num_layers]
        acc_ref = refs[2 + n_per_layer * num_layers]
        NL = x_ref.shape[1]                       # = B * L (static)

        # Hoisted per-tap edge masks (position within each batch segment).
        j = lax.broadcasted_iota(jnp.int32, (c_b, NL), 1) % L
        tap_masks = []
        for k in range(K):
            off = k - left
            if off == 0:
                tap_masks.append(None)            # center tap: no mask needed
            elif off < 0:
                tap_masks.append(j >= -off)       # left-edge mask only
            else:
                tap_masks.append(j < L - off)     # right-edge mask only

        # Seed the accumulator with the block input.
        acc_ref[pl.ds(0, c_in), :] = x_ref[...].astype(jnp.float32)

        c_prev = c_in
        for li in range(num_layers):
            base = 1 + li * n_per_layer
            s1, t1, w1, b1, s2, t2, w2r, b2 = refs[base:base + n_per_layer]

            act = acc_ref[pl.ds(0, c_prev), :]               # (C_prev, NL) f32

            # Bottleneck: ReLU -> folded BN -> 1x1 conv (one matmul).
            h = jnp.maximum(act, 0.0) * s1[...] + t1[...]
            bk = jnp.dot(w1[...], h.astype(mxu_dtype),
                         preferred_element_type=jnp.float32) + b1[...]

            # Conv path: ReLU -> folded BN.
            g = jnp.maximum(bk, 0.0) * s2[...] + t2[...]     # (Cb, NL)

            # im2col slab (K*Cb, NL): K shifted copies of g, edges zeroed.
            cols = []
            for k in range(K):
                off = k - left
                gk = g if off == 0 else pltpu.roll(g, shift=(-off) % NL, axis=1)
                if tap_masks[k] is not None:
                    gk = jnp.where(tap_masks[k], gk, 0.0)
                cols.append(gk)
            slab = jnp.concatenate(cols, axis=0)

            # Single MXU matmul for the whole k-tap 'same' convolution.
            out = jnp.dot(w2r[...], slab.astype(mxu_dtype),
                          preferred_element_type=jnp.float32) + b2[...]

            # Dense concat = write just this layer's rows into the accumulator.
            acc_ref[pl.ds(c_prev, c_out), :] = out
            c_prev += c_out

        # One dense lane-major output store.
        o_ref[...] = acc_ref[...].astype(o_ref.dtype)

    return kernel


# ------------------------------ Pallas wrapper ------------------------------ #
_PARAM_NAMES = ("s1", "t1", "w1", "b1", "s2", "t2", "w2r", "b2")
_MXU_PARAMS = ("w1", "w2r")   # pre-cast to mxu_dtype in wrapper (halves DMA for bf16)


def dense_block_pallas(x, layer_params, *, mxu_dtype=jnp.float32):
    """x: (B, Cin, L) -> (B, Cin + num_layers*Cout, L), fused single pallas_call."""
    B, c_in, L = x.shape
    num_layers = len(layer_params)
    c_b = layer_params[0]["b1"].shape[0]
    c_out = layer_params[0]["b2"].shape[0]
    K = layer_params[0]["w2r"].shape[1] // c_b
    c_total = c_in + num_layers * c_out
    NL = B * L

    # Lane-dense layout: fold batch into the lane axis (layout plumbing only).
    x2 = jnp.transpose(x, (1, 0, 2)).reshape(c_in, NL)

    inputs = [x2]
    in_specs = [pl.BlockSpec((c_in, NL), lambda i: (0, 0))]
    for p in layer_params:
        for name in _PARAM_NAMES:
            a = p[name]
            if name in _MXU_PARAMS:
                a = a.astype(mxu_dtype)
            inputs.append(a)
            in_specs.append(pl.BlockSpec(a.shape, lambda i: (0, 0)))
    out_specs = pl.BlockSpec((c_total, NL), lambda i: (0, 0))

    kernel = make_dense_block_kernel(
        num_layers=num_layers, L=L, K=K,
        c_in=c_in, c_out=c_out, c_b=c_b, mxu_dtype=mxu_dtype)

    y2 = pl.pallas_call(
        kernel,
        grid=(1,),
        in_specs=in_specs,
        out_specs=out_specs,
        out_shape=jax.ShapeDtypeStruct((c_total, NL), x.dtype),
        scratch_shapes=[pltpu.VMEM((c_total, NL), jnp.float32)],
        compiler_params=pltpu.CompilerParams(dimension_semantics=("arbitrary",)),
    )(*inputs)

    return jnp.transpose(y2.reshape(c_total, B, L), (1, 0, 2))


# --------------------------- parameter creation ----------------------------- #
def make_layer_params(key, c_in, c_out, c_b, K, eps=1e-5):
    ks = jax.random.split(key, 14)
    # BN1 (over c_in channels)
    g1 = 1.0 + 0.1 * jax.random.normal(ks[0], (c_in,), jnp.float32)
    be1 = 0.1 * jax.random.normal(ks[1], (c_in,), jnp.float32)
    m1 = 0.1 * jax.random.normal(ks[2], (c_in,), jnp.float32)
    v1 = 1.0 + 0.5 * jax.random.uniform(ks[3], (c_in,), jnp.float32)
    # Conv1d(c_in -> c_b, kernel=1)
    w1_full = 0.3 * jax.random.normal(ks[4], (c_b, c_in, 1), jnp.float32)
    b1 = 0.1 * jax.random.normal(ks[5], (c_b,), jnp.float32)
    # BN2 (over c_b channels)
    g2 = 1.0 + 0.1 * jax.random.normal(ks[6], (c_b,), jnp.float32)
    be2 = 0.1 * jax.random.normal(ks[7], (c_b,), jnp.float32)
    m2 = 0.1 * jax.random.normal(ks[8], (c_b,), jnp.float32)
    v2 = 1.0 + 0.5 * jax.random.uniform(ks[9], (c_b,), jnp.float32)
    # Conv1d(c_b -> c_out, kernel=K, padding='same')
    w2_full = 0.3 * jax.random.normal(ks[10], (c_out, c_b, K), jnp.float32)
    b2 = 0.1 * jax.random.normal(ks[11], (c_out,), jnp.float32)

    s1 = g1 / jnp.sqrt(v1 + eps)
    t1 = be1 - m1 * s1
    s2 = g2 / jnp.sqrt(v2 + eps)
    t2 = be2 - m2 * s2

    # Lane-dense k-tap weight: w2r[co, k*Cb + cb] = w2_full[co, cb, k]
    w2r = jnp.transpose(w2_full, (0, 2, 1)).reshape(c_out, K * c_b)

    return {
        "s1": s1[:, None], "t1": t1[:, None],
        "w1": w1_full[:, :, 0], "b1": b1[:, None],
        "s2": s2[:, None], "t2": t2[:, None],
        "w2r": w2r, "b2": b2[:, None],
        # originals kept for the pure-JAX reference
        "w1_full": w1_full, "w2_full": w2_full,
    }


# ------------------------------ JAX reference ------------------------------- #
def ref_dense_block(x, layer_params, mxu_dtype=jnp.float32):
    dn = ("NCW", "OIW", "NCW")
    for p in layer_params:
        h = jnp.maximum(x, 0.0) * p["s1"][None] + p["t1"][None]
        b = lax.conv_general_dilated(
            h.astype(mxu_dtype), p["w1_full"].astype(mxu_dtype), (1,), [(0, 0)],
            dimension_numbers=dn, preferred_element_type=jnp.float32) + p["b1"][None]
        g = jnp.maximum(b, 0.0) * p["s2"][None] + p["t2"][None]
        K = p["w2_full"].shape[2]
        left = (K - 1) // 2
        right = K - 1 - left
        out = lax.conv_general_dilated(
            g.astype(mxu_dtype), p["w2_full"].astype(mxu_dtype), (1,), [(left, right)],
            dimension_numbers=dn, preferred_element_type=jnp.float32) + p["b2"][None]
        x = jnp.concatenate([x, out], axis=1)
    return x


# ----------------------------------- main ----------------------------------- #
if __name__ == "__main__":
    num_layers = 3
    in_channels = 4
    out_channels = 4
    bottleneck_channels = 8
    kernel_size = 3
    B, L = 2, 16

    root = jax.random.PRNGKey(0)
    kx, kp = jax.random.split(root)
    x = jax.random.normal(kx, (B, in_channels, L), jnp.float32)

    layer_params = [
        make_layer_params(jax.random.fold_in(kp, i),
                          in_channels + i * out_channels,
                          out_channels, bottleneck_channels, kernel_size)
        for i in range(num_layers)
    ]

    expected_channels = in_channels + num_layers * out_channels

    # --- f32-MXU path: strict check against the f32 JAX reference. ---
    y = dense_block_pallas(x, layer_params, mxu_dtype=jnp.float32)
    y = jax.block_until_ready(y)
    assert y.shape == (B, expected_channels, L), y.shape

    y_ref = ref_dense_block(x, layer_params)
    if not jnp.allclose(y, y_ref, rtol=1e-4, atol=1e-4):
        max_err = float(jnp.max(jnp.abs(y - y_ref)))
        raise AssertionError(f"f32 Pallas mismatch vs JAX reference, max|err|={max_err}")

    # --- bf16-MXU-operand path (v6e/v7x recommendation): check against a
    #     reference that also feeds bf16 operands to the convs. ---
    y_bf = dense_block_pallas(x, layer_params, mxu_dtype=jnp.bfloat16)
    y_bf = jax.block_until_ready(y_bf)
    y_ref_bf = ref_dense_block(x, layer_params, mxu_dtype=jnp.bfloat16)
    if not jnp.allclose(y_bf, y_ref_bf, rtol=1e-3, atol=1e-3):
        max_err = float(jnp.max(jnp.abs(y_bf - y_ref_bf)))
        raise AssertionError(f"bf16 Pallas mismatch vs bf16 JAX reference, max|err|={max_err}")

    print("KERNEL_OK")
</pallas_src>

<mosaic_0001>
module attributes {stable_mosaic.version = 11 : i64} {
  func.func @kernel(%arg0: i32, %arg1: memref<4x32xf32, #tpu.memory_space<vmem>>, %arg2: memref<4x1xf32, #tpu.memory_space<vmem>>, %arg3: memref<4x1xf32, #tpu.memory_space<vmem>>, %arg4: memref<8x4xf32, #tpu.memory_space<vmem>>, %arg5: memref<8x1xf32, #tpu.memory_space<vmem>>, %arg6: memref<8x1xf32, #tpu.memory_space<vmem>>, %arg7: memref<8x1xf32, #tpu.memory_space<vmem>>, %arg8: memref<4x24xf32, #tpu.memory_space<vmem>>, %arg9: memref<4x1xf32, #tpu.memory_space<vmem>>, %arg10: memref<8x1xf32, #tpu.memory_space<vmem>>, %arg11: memref<8x1xf32, #tpu.memory_space<vmem>>, %arg12: memref<8x8xf32, #tpu.memory_space<vmem>>, %arg13: memref<8x1xf32, #tpu.memory_space<vmem>>, %arg14: memref<8x1xf32, #tpu.memory_space<vmem>>, %arg15: memref<8x1xf32, #tpu.memory_space<vmem>>, %arg16: memref<4x24xf32, #tpu.memory_space<vmem>>, %arg17: memref<4x1xf32, #tpu.memory_space<vmem>>, %arg18: memref<12x1xf32, #tpu.memory_space<vmem>>, %arg19: memref<12x1xf32, #tpu.memory_space<vmem>>, %arg20: memref<8x12xf32, #tpu.memory_space<vmem>>, %arg21: memref<8x1xf32, #tpu.memory_space<vmem>>, %arg22: memref<8x1xf32, #tpu.memory_space<vmem>>, %arg23: memref<8x1xf32, #tpu.memory_space<vmem>>, %arg24: memref<4x24xf32, #tpu.memory_space<vmem>>, %arg25: memref<4x1xf32, #tpu.memory_space<vmem>>, %arg26: memref<16x32xf32, #tpu.memory_space<vmem>>, %arg27: memref<16x32xf32, #tpu.memory_space<vmem>>) attributes {dimension_semantics = [#tpu.dimension_semantics<arbitrary>], iteration_bounds = array<i64: 1>, scalar_prefetch = 0 : i64, scratch_operands = 1 : i64, tpu.core_type = #tpu.core_type<tc>, window_params = [{pipeline_mode = #tpu.pipeline_mode<synchronous>, transform_indices = @transform_0, window_bounds = array<i64: 4, 32>}, {pipeline_mode = #tpu.pipeline_mode<synchronous>, transform_indices = @transform_1, window_bounds = array<i64: 4, 1>}, {pipeline_mode = #tpu.pipeline_mode<synchronous>, transform_indices = @transform_2, window_bounds = array<i64: 4, 1>}, {pipeline_mode = #tpu.pipeline_mode<synchronous>, transform_indices = @transform_3, window_bounds = array<i64: 8, 4>}, {pipeline_mode = #tpu.pipeline_mode<synchronous>, transform_indices = @transform_4, window_bounds = array<i64: 8, 1>}, {pipeline_mode = #tpu.pipeline_mode<synchronous>, transform_indices = @transform_5, window_bounds = array<i64: 8, 1>}, {pipeline_mode = #tpu.pipeline_mode<synchronous>, transform_indices = @transform_6, window_bounds = array<i64: 8, 1>}, {pipeline_mode = #tpu.pipeline_mode<synchronous>, transform_indices = @transform_7, window_bounds = array<i64: 4, 24>}, {pipeline_mode = #tpu.pipeline_mode<synchronous>, transform_indices = @transform_8, window_bounds = array<i64: 4, 1>}, {pipeline_mode = #tpu.pipeline_mode<synchronous>, transform_indices = @transform_9, window_bounds = array<i64: 8, 1>}, {pipeline_mode = #tpu.pipeline_mode<synchronous>, transform_indices = @transform_10, window_bounds = array<i64: 8, 1>}, {pipeline_mode = #tpu.pipeline_mode<synchronous>, transform_indices = @transform_11, window_bounds = array<i64: 8, 8>}, {pipeline_mode = #tpu.pipeline_mode<synchronous>, transform_indices = @transform_12, window_bounds = array<i64: 8, 1>}, {pipeline_mode = #tpu.pipeline_mode<synchronous>, transform_indices = @transform_13, window_bounds = array<i64: 8, 1>}, {pipeline_mode = #tpu.pipeline_mode<synchronous>, transform_indices = @transform_14, window_bounds = array<i64: 8, 1>}, {pipeline_mode = #tpu.pipeline_mode<synchronous>, transform_indices = @transform_15, window_bounds = array<i64: 4, 24>}, {pipeline_mode = #tpu.pipeline_mode<synchronous>, transform_indices = @transform_16, window_bounds = array<i64: 4, 1>}, {pipeline_mode = #tpu.pipeline_mode<synchronous>, transform_indices = @transform_17, window_bounds = array<i64: 12, 1>}, {pipeline_mode = #tpu.pipeline_mode<synchronous>, transform_indices = @transform_18, window_bounds = array<i64: 12, 1>}, {pipeline_mode = #tpu.pipeline_mode<synchronous>, transform_indices = @transform_19, window_bounds = array<i64: 8, 12>}, {pipeline_mode = #tpu.pipeline_mode<synchronous>, transform_indices = @transform_20, window_bounds = array<i64: 8, 1>}, {pipeline_mode = #tpu.pipeline_mode<synchronous>, transform_indices = @transform_21, window_bounds = array<i64: 8, 1>}, {pipeline_mode = #tpu.pipeline_mode<synchronous>, transform_indices = @transform_22, window_bounds = array<i64: 8, 1>}, {pipeline_mode = #tpu.pipeline_mode<synchronous>, transform_indices = @transform_23, window_bounds = array<i64: 4, 24>}, {pipeline_mode = #tpu.pipeline_mode<synchronous>, transform_indices = @transform_24, window_bounds = array<i64: 4, 1>}, {pipeline_mode = #tpu.pipeline_mode<synchronous>, transform_indices = @transform_25, window_bounds = array<i64: 16, 32>}]} {
    %0 = tpu.iota {dimensions = array<i32: 1>} : vector<8x32xi32>
    %c16_i32 = arith.constant 16 : i32
    %c0_i32 = arith.constant 0 : i32
    %1 = arith.cmpi eq, %c16_i32, %c0_i32 : i32
    %c1_i32 = arith.constant 1 : i32
    %2 = arith.select %1, %c1_i32, %c16_i32 : i32
    %3 = vector.broadcast %2 : i32 to vector<8x32xi32>
    %4 = arith.remsi %0, %3 : vector<8x32xi32>
    %c0_i32_0 = arith.constant 0 : i32
    %5 = vector.broadcast %c0_i32_0 : i32 to vector<8x32xi32>
    %6 = arith.cmpi ne, %4, %5 : vector<8x32xi32>
    %c0_i32_1 = arith.constant 0 : i32
    %7 = vector.broadcast %c0_i32_1 : i32 to vector<8x32xi32>
    %8 = arith.cmpi slt, %4, %7 : vector<8x32xi32>
    %c0_i32_2 = arith.constant 0 : i32
    %9 = arith.cmpi slt, %2, %c0_i32_2 : i32
    %10 = vector.broadcast %9 : i1 to vector<8x32xi1>
    %11 = vector.broadcast %10 : vector<8x32xi1> to vector<8x32xi1>
    %12 = arith.xori %8, %11 : vector<8x32xi1>
    %13 = arith.andi %12, %6 : vector<8x32xi1>
    %14 = vector.broadcast %2 : i32 to vector<8x32xi32>
    %15 = arith.addi %4, %14 : vector<8x32xi32>
    %16 = arith.select %13, %15, %4 : vector<8x32xi1>, vector<8x32xi32>
    %c1_i32_3 = arith.constant 1 : i32
    %17 = vector.broadcast %c1_i32_3 : i32 to vector<8x32xi32>
    %18 = arith.cmpi sge, %16, %17 : vector<8x32xi32>
    %c15_i32 = arith.constant 15 : i32
    %19 = vector.broadcast %c15_i32 : i32 to vector<8x32xi32>
    %20 = arith.cmpi slt, %16, %19 : vector<8x32xi32>
    %c0 = arith.constant 0 : index
    %c0_4 = arith.constant 0 : index
    %21 = vector.load %arg1[%c0, %c0_4] : memref<4x32xf32, #tpu.memory_space<vmem>>, vector<4x32xf32>
    %c0_5 = arith.constant 0 : index
    %c0_6 = arith.constant 0 : index
    %22 = vector.load %arg27[%c0_5, %c0_6] : memref<16x32xf32, #tpu.memory_space<vmem>>, vector<4x32xf32>
    tpu.vector_store %arg27[%c0_5, %c0_6], %21 {strides = array<i32>} : memref<16x32xf32, #tpu.memory_space<vmem>>, vector<4x32xf32>,
    %c0_7 = arith.constant 0 : index
    %c0_8 = arith.constant 0 : index
    %23 = vector.load %arg27[%c0_7, %c0_8] : memref<16x32xf32, #tpu.memory_space<vmem>>, vector<4x32xf32>
    %cst = arith.constant 0.000000e+00 : f32
    %24 = vector.broadcast %cst : f32 to vector<4x32xf32>
    %25 = arith.maximumf %23, %24 : vector<4x32xf32>
    %c0_9 = arith.constant 0 : index
    %c0_10 = arith.constant 0 : index
    %26 = vector.load %arg2[%c0_9, %c0_10] : memref<4x1xf32, #tpu.memory_space<vmem>>, vector<4x1xf32>
    %27 = vector.broadcast %26 : vector<4x1xf32> to vector<4x32xf32>
    %28 = arith.mulf %25, %27 : vector<4x32xf32>
    %c0_11 = arith.constant 0 : index
    %c0_12 = arith.constant 0 : index
    %29 = vector.load %arg3[%c0_11, %c0_12] : memref<4x1xf32, #tpu.memory_space<vmem>>, vector<4x1xf32>
    %30 = vector.broadcast %29 : vector<4x1xf32> to vector<4x32xf32>
    %31 = arith.addf %28, %30 : vector<4x32xf32>
    %c0_13 = arith.constant 0 : index
    %c0_14 = arith.constant 0 : index
    %32 = vector.load %arg4[%c0_13, %c0_14] : memref<8x4xf32, #tpu.memory_space<vmem>>, vector<8x4xf32>
    %cst_15 = arith.constant dense<0.000000e+00> : vector<8x32xf32>
    %33 = tpu.matmul %32, %31, %cst_15 {dimension_numbers = #tpu.dot_dimension_numbers<[1], [0], [0], [1], [0, 0, 1, 1], [], []>} : vector<8x4xf32>, vector<4x32xf32>, vector<8x32xf32> -> vector<8x32xf32>
    %c0_16 = arith.constant 0 : index
    %c0_17 = arith.constant 0 : index
    %34 = vector.load %arg5[%c0_16, %c0_17] : memref<8x1xf32, #tpu.memory_space<vmem>>, vector<8x1xf32>
    %35 = vector.broadcast %34 : vector<8x1xf32> to vector<8x32xf32>
    %36 = arith.addf %33, %35 : vector<8x32xf32>
    %cst_18 = arith.constant 0.000000e+00 : f32
    %37 = vector.broadcast %cst_18 : f32 to vector<8x32xf32>
    %38 = arith.maximumf %36, %37 : vector<8x32xf32>
    %c0_19 = arith.constant 0 : index
    %c0_20 = arith.constant 0 : index
    %39 = vector.load %arg6[%c0_19, %c0_20] : memref<8x1xf32, #tpu.memory_space<vmem>>, vector<8x1xf32>
    %40 = vector.broadcast %39 : vector<8x1xf32> to vector<8x32xf32>
    %41 = arith.mulf %38, %40 : vector<8x32xf32>
    %c0_21 = arith.constant 0 : index
    %c0_22 = arith.constant 0 : index
    %42 = vector.load %arg7[%c0_21, %c0_22] : memref<8x1xf32, #tpu.memory_space<vmem>>, vector<8x1xf32>
    %43 = vector.broadcast %42 : vector<8x1xf32> to vector<8x32xf32>
    %44 = arith.addf %41, %43 : vector<8x32xf32>
    %c1_i32_23 = arith.constant 1 : i32
    %45 = tpu.dynamic_rotate %44 by %c1_i32_23 dim 1 : vector<8x32xf32>, i32 -> vector<8x32xf32>
    %cst_24 = arith.constant 0.000000e+00 : f32
    %46 = vector.broadcast %cst_24 : f32 to vector<8x32xf32>
    %47 = arith.select %18, %45, %46 : vector<8x32xi1>, vector<8x32xf32>
    %c31_i32 = arith.constant 31 : i32
    %48 = tpu.dynamic_rotate %44 by %c31_i32 dim 1 : vector<8x32xf32>, i32 -> vector<8x32xf32>
    %cst_25 = arith.constant 0.000000e+00 : f32
    %49 = vector.broadcast %cst_25 : f32 to vector<8x32xf32>
    %50 = arith.select %20, %48, %49 : vector<8x32xi1>, vector<8x32xf32>
    %51 = tpu.concatenate %47, %44, %50 in 0 : vector<8x32xf32>, vector<8x32xf32>, vector<8x32xf32> -> vector<24x32xf32>
    %c0_26 = arith.constant 0 : index
    %c0_27 = arith.constant 0 : index
    %52 = vector.load %arg8[%c0_26, %c0_27] : memref<4x24xf32, #tpu.memory_space<vmem>>, vector<4x24xf32>
    %cst_28 = arith.constant dense<0.000000e+00> : vector<4x32xf32>
    %53 = tpu.matmul %52, %51, %cst_28 {dimension_numbers = #tpu.dot_dimension_numbers<[1], [0], [0], [1], [0, 0, 1, 1], [], []>} : vector<4x24xf32>, vector<24x32xf32>, vector<4x32xf32> -> vector<4x32xf32>
    %c0_29 = arith.constant 0 : index
    %c0_30 = arith.constant 0 : index
    %54 = vector.load %arg9[%c0_29, %c0_30] : memref<4x1xf32, #tpu.memory_space<vmem>>, vector<4x1xf32>
    %55 = vector.broadcast %54 : vector<4x1xf32> to vector<4x32xf32>
    %56 = arith.addf %53, %55 : vector<4x32xf32>
    %c4 = arith.constant 4 : index
    %c0_31 = arith.constant 0 : index
    %57 = vector.load %arg27[%c4, %c0_31] : memref<16x32xf32, #tpu.memory_space<vmem>>, vector<4x32xf32>
    tpu.vector_store %arg27[%c4, %c0_31], %56 {strides = array<i32>} : memref<16x32xf32, #tpu.memory_space<vmem>>, vector<4x32xf32>,
    %c0_32 = arith.constant 0 : index
    %c0_33 = arith.constant 0 : index
    %58 = vector.load %arg27[%c0_32, %c0_33] : memref<16x32xf32, #tpu.memory_space<vmem>>, vector<8x32xf32>
    %cst_34 = arith.constant 0.000000e+00 : f32
    %59 = vector.broadcast %cst_34 : f32 to vector<8x32xf32>
    %60 = arith.maximumf %58, %59 : vector<8x32xf32>
    %c0_35 = arith.constant 0 : index
    %c0_36 = arith.constant 0 : index
    %61 = vector.load %arg10[%c0_35, %c0_36] : memref<8x1xf32, #tpu.memory_space<vmem>>, vector<8x1xf32>
    %62 = vector.broadcast %61 : vector<8x1xf32> to vector<8x32xf32>
    %63 = arith.mulf %60, %62 : vector<8x32xf32>
    %c0_37 = arith.constant 0 : index
    %c0_38 = arith.constant 0 : index
    %64 = vector.load %arg11[%c0_37, %c0_38] : memref<8x1xf32, #tpu.memory_space<vmem>>, vector<8x1xf32>
    %65 = vector.broadcast %64 : vector<8x1xf32> to vector<8x32xf32>
    %66 = arith.addf %63, %65 : vector<8x32xf32>
    %c0_39 = arith.constant 0 : index
    %c0_40 = arith.constant 0 : index
    %67 = vector.load %arg12[%c0_39, %c0_40] : memref<8x8xf32, #tpu.memory_space<vmem>>, vector<8x8xf32>
    %cst_41 = arith.constant dense<0.000000e+00> : vector<8x32xf32>
    %68 = tpu.matmul %67, %66, %cst_41 {dimension_numbers = #tpu.dot_dimension_numbers<[1], [0], [0], [1], [0, 0, 1, 1], [], []>} : vector<8x8xf32>, vector<8x32xf32>, vector<8x32xf32> -> vector<8x32xf32>
    %c0_42 = arith.constant 0 : index
    %c0_43 = arith.constant 0 : index
    %69 = vector.load %arg13[%c0_42, %c0_43] : memref<8x1xf32, #tpu.memory_space<vmem>>, vector<8x1xf32>
    %70 = vector.broadcast %69 : vector<8x1xf32> to vector<8x32xf32>
    %71 = arith.addf %68, %70 : vector<8x32xf32>
    %cst_44 = arith.constant 0.000000e+00 : f32
    %72 = vector.broadcast %cst_44 : f32 to vector<8x32xf32>
    %73 = arith.maximumf %71, %72 : vector<8x32xf32>
    %c0_45 = arith.constant 0 : index
    %c0_46 = arith.constant 0 : index
    %74 = vector.load %arg14[%c0_45, %c0_46] : memref<8x1xf32, #tpu.memory_space<vmem>>, vector<8x1xf32>
    %75 = vector.broadcast %74 : vector<8x1xf32> to vector<8x32xf32>
    %76 = arith.mulf %73, %75 : vector<8x32xf32>
    %c0_47 = arith.constant 0 : index
    %c0_48 = arith.constant 0 : index
    %77 = vector.load %arg15[%c0_47, %c0_48] : memref<8x1xf32, #tpu.memory_space<vmem>>, vector<8x1xf32>
    %78 = vector.broadcast %77 : vector<8x1xf32> to vector<8x32xf32>
    %79 = arith.addf %76, %78 : vector<8x32xf32>
    %c1_i32_49 = arith.constant 1 : i32
    %80 = tpu.dynamic_rotate %79 by %c1_i32_49 dim 1 : vector<8x32xf32>, i32 -> vector<8x32xf32>
    %cst_50 = arith.constant 0.000000e+00 : f32
    %81 = vector.broadcast %cst_50 : f32 to vector<8x32xf32>
    %82 = arith.select %18, %80, %81 : vector<8x32xi1>, vector<8x32xf32>
    %c31_i32_51 = arith.constant 31 : i32
    %83 = tpu.dynamic_rotate %79 by %c31_i32_51 dim 1 : vector<8x32xf32>, i32 -> vector<8x32xf32>
    %cst_52 = arith.constant 0.000000e+00 : f32
    %84 = vector.broadcast %cst_52 : f32 to vector<8x32xf32>
    %85 = arith.select %20, %83, %84 : vector<8x32xi1>, vector<8x32xf32>
    %86 = tpu.concatenate %82, %79, %85 in 0 : vector<8x32xf32>, vector<8x32xf32>, vector<8x32xf32> -> vector<24x32xf32>
    %c0_53 = arith.constant 0 : index
    %c0_54 = arith.constant 0 : index
    %87 = vector.load %arg16[%c0_53, %c0_54] : memref<4x24xf32, #tpu.memory_space<vmem>>, vector<4x24xf32>
    %cst_55 = arith.constant dense<0.000000e+00> : vector<4x32xf32>
    %88 = tpu.matmul %87, %86, %cst_55 {dimension_numbers = #tpu.dot_dimension_numbers<[1], [0], [0], [1], [0, 0, 1, 1], [], []>} : vector<4x24xf32>, vector<24x32xf32>, vector<4x32xf32> -> vector<4x32xf32>
    %c0_56 = arith.constant 0 : index
    %c0_57 = arith.constant 0 : index
    %89 = vector.load %arg17[%c0_56, %c0_57] : memref<4x1xf32, #tpu.memory_space<vmem>>, vector<4x1xf32>
    %90 = vector.broadcast %89 : vector<4x1xf32> to vector<4x32xf32>
    %91 = arith.addf %88, %90 : vector<4x32xf32>
    %c8 = arith.constant 8 : index
    %c0_58 = arith.constant 0 : index
    %92 = vector.load %arg27[%c8, %c0_58] : memref<16x32xf32, #tpu.memory_space<vmem>>, vector<4x32xf32>
    tpu.vector_store %arg27[%c8, %c0_58], %91 {strides = array<i32>} : memref<16x32xf32, #tpu.memory_space<vmem>>, vector<4x32xf32>,
    %c0_59 = arith.constant 0 : index
    %c0_60 = arith.constant 0 : index
    %93 = vector.load %arg27[%c0_59, %c0_60] : memref<16x32xf32, #tpu.memory_space<vmem>>, vector<12x32xf32>
    %cst_61 = arith.constant 0.000000e+00 : f32
    %94 = vector.broadcast %cst_61 : f32 to vector<12x32xf32>
    %95 = arith.maximumf %93, %94 : vector<12x32xf32>
    %c0_62 = arith.constant 0 : index
    %c0_63 = arith.constant 0 : index
    %96 = vector.load %arg18[%c0_62, %c0_63] : memref<12x1xf32, #tpu.memory_space<vmem>>, vector<12x1xf32>
    %97 = vector.broadcast %96 : vector<12x1xf32> to vector<12x32xf32>
    %98 = arith.mulf %95, %97 : vector<12x32xf32>
    %c0_64 = arith.constant 0 : index
    %c0_65 = arith.constant 0 : index
    %99 = vector.load %arg19[%c0_64, %c0_65] : memref<12x1xf32, #tpu.memory_space<vmem>>, vector<12x1xf32>
    %100 = vector.broadcast %99 : vector<12x1xf32> to vector<12x32xf32>
    %101 = arith.addf %98, %100 : vector<12x32xf32>
    %c0_66 = arith.constant 0 : index
    %c0_67 = arith.constant 0 : index
    %102 = vector.load %arg20[%c0_66, %c0_67] : memref<8x12xf32, #tpu.memory_space<vmem>>, vector<8x12xf32>
    %cst_68 = arith.constant dense<0.000000e+00> : vector<8x32xf32>
    %103 = tpu.matmul %102, %101, %cst_68 {dimension_numbers = #tpu.dot_dimension_numbers<[1], [0], [0], [1], [0, 0, 1, 1], [], []>} : vector<8x12xf32>, vector<12x32xf32>, vector<8x32xf32> -> vector<8x32xf32>
    %c0_69 = arith.constant 0 : index
    %c0_70 = arith.constant 0 : index
    %104 = vector.load %arg21[%c0_69, %c0_70] : memref<8x1xf32, #tpu.memory_space<vmem>>, vector<8x1xf32>
    %105 = vector.broadcast %104 : vector<8x1xf32> to vector<8x32xf32>
    %106 = arith.addf %103, %105 : vector<8x32xf32>
    %cst_71 = arith.constant 0.000000e+00 : f32
    %107 = vector.broadcast %cst_71 : f32 to vector<8x32xf32>
    %108 = arith.maximumf %106, %107 : vector<8x32xf32>
    %c0_72 = arith.constant 0 : index
    %c0_73 = arith.constant 0 : index
    %109 = vector.load %arg22[%c0_72, %c0_73] : memref<8x1xf32, #tpu.memory_space<vmem>>, vector<8x1xf32>
    %110 = vector.broadcast %109 : vector<8x1xf32> to vector<8x32xf32>
    %111 = arith.mulf %108, %110 : vector<8x32xf32>
    %c0_74 = arith.constant 0 : index
    %c0_75 = arith.constant 0 : index
    %112 = vector.load %arg23[%c0_74, %c0_75] : memref<8x1xf32, #tpu.memory_space<vmem>>, vector<8x1xf32>
    %113 = vector.broadcast %112 : vector<8x1xf32> to vector<8x32xf32>
    %114 = arith.addf %111, %113 : vector<8x32xf32>
    %c1_i32_76 = arith.constant 1 : i32
    %115 = tpu.dynamic_rotate %114 by %c1_i32_76 dim 1 : vector<8x32xf32>, i32 -> vector<8x32xf32>
    %cst_77 = arith.constant 0.000000e+00 : f32
    %116 = vector.broadcast %cst_77 : f32 to vector<8x32xf32>
    %117 = arith.select %18, %115, %116 : vector<8x32xi1>, vector<8x32xf32>
    %c31_i32_78 = arith.constant 31 : i32
    %118 = tpu.dynamic_rotate %114 by %c31_i32_78 dim 1 : vector<8x32xf32>, i32 -> vector<8x32xf32>
    %cst_79 = arith.constant 0.000000e+00 : f32
    %119 = vector.broadcast %cst_79 : f32 to vector<8x32xf32>
    %120 = arith.select %20, %118, %119 : vector<8x32xi1>, vector<8x32xf32>
    %121 = tpu.concatenate %117, %114, %120 in 0 : vector<8x32xf32>, vector<8x32xf32>, vector<8x32xf32> -> vector<24x32xf32>
    %c0_80 = arith.constant 0 : index
    %c0_81 = arith.constant 0 : index
    %122 = vector.load %arg24[%c0_80, %c0_81] : memref<4x24xf32, #tpu.memory_space<vmem>>, vector<4x24xf32>
    %cst_82 = arith.constant dense<0.000000e+00> : vector<4x32xf32>
    %123 = tpu.matmul %122, %121, %cst_82 {dimension_numbers = #tpu.dot_dimension_numbers<[1], [0], [0], [1], [0, 0, 1, 1], [], []>} : vector<4x24xf32>, vector<24x32xf32>, vector<4x32xf32> -> vector<4x32xf32>
    %c0_83 = arith.constant 0 : index
    %c0_84 = arith.constant 0 : index
    %124 = vector.load %arg25[%c0_83, %c0_84] : memref<4x1xf32, #tpu.memory_space<vmem>>, vector<4x1xf32>
    %125 = vector.broadcast %124 : vector<4x1xf32> to vector<4x32xf32>
    %126 = arith.addf %123, %125 : vector<4x32xf32>
    %c12 = arith.constant 12 : index
    %c0_85 = arith.constant 0 : index
    %127 = vector.load %arg27[%c12, %c0_85] : memref<16x32xf32, #tpu.memory_space<vmem>>, vector<4x32xf32>
    tpu.vector_store %arg27[%c12, %c0_85], %126 {strides = array<i32>} : memref<16x32xf32, #tpu.memory_space<vmem>>, vector<4x32xf32>,
    %c0_86 = arith.constant 0 : index
    %c0_87 = arith.constant 0 : index
    %128 = vector.load %arg27[%c0_86, %c0_87] : memref<16x32xf32, #tpu.memory_space<vmem>>, vector<16x32xf32>
    %c0_88 = arith.constant 0 : index
    %c0_89 = arith.constant 0 : index
    %129 = vector.load %arg26[%c0_88, %c0_89] : memref<16x32xf32, #tpu.memory_space<vmem>>, vector<16x32xf32>
    tpu.vector_store %arg26[%c0_88, %c0_89], %128 {strides = array<i32>} : memref<16x32xf32, #tpu.memory_space<vmem>>, vector<16x32xf32>,
    return
  }
  func.func @transform_0(%arg0: i32) -> (i32, i32) {
    %c0_i32 = arith.constant 0 : i32
    %c0_i32_0 = arith.constant 0 : i32
    %c0_i32_1 = arith.constant 0 : i32
    return %c0_i32, %c0_i32_0 : i32, i32
  }
  func.func @transform_1(%arg0: i32) -> (i32, i32) {
    %c0_i32 = arith.constant 0 : i32
    %c0_i32_0 = arith.constant 0 : i32
    %c0_i32_1 = arith.constant 0 : i32
    return %c0_i32, %c0_i32_0 : i32, i32
  }
  func.func @transform_2(%arg0: i32) -> (i32, i32) {
    %c0_i32 = arith.constant 0 : i32
    %c0_i32_0 = arith.constant 0 : i32
    %c0_i32_1 = arith.constant 0 : i32
    return %c0_i32, %c0_i32_0 : i32, i32
  }
  func.func @transform_3(%arg0: i32) -> (i32, i32) {
    %c0_i32 = arith.constant 0 : i32
    %c0_i32_0 = arith.constant 0 : i32
    %c0_i32_1 = arith.constant 0 : i32
    return %c0_i32, %c0_i32_0 : i32, i32
  }
  func.func @transform_4(%arg0: i32) -> (i32, i32) {
    %c0_i32 = arith.constant 0 : i32
    %c0_i32_0 = arith.constant 0 : i32
    %c0_i32_1 = arith.constant 0 : i32
    return %c0_i32, %c0_i32_0 : i32, i32
  }
  func.func @transform_5(%arg0: i32) -> (i32, i32) {
    %c0_i32 = arith.constant 0 : i32
    %c0_i32_0 = arith.constant 0 : i32
    %c0_i32_1 = arith.constant 0 : i32
    return %c0_i32, %c0_i32_0 : i32, i32
  }
  func.func @transform_6(%arg0: i32) -> (i32, i32) {
    %c0_i32 = arith.constant 0 : i32
    %c0_i32_0 = arith.constant 0 : i32
    %c0_i32_1 = arith.constant 0 : i32
    return %c0_i32, %c0_i32_0 : i32, i32
  }
  func.func @transform_7(%arg0: i32) -> (i32, i32) {
    %c0_i32 = arith.constant 0 : i32
    %c0_i32_0 = arith.constant 0 : i32
    %c0_i32_1 = arith.constant 0 : i32
    return %c0_i32, %c0_i32_0 : i32, i32
  }
  func.func @transform_8(%arg0: i32) -> (i32, i32) {
    %c0_i32 = arith.constant 0 : i32
    %c0_i32_0 = arith.constant 0 : i32
    %c0_i32_1 = arith.constant 0 : i32
    return %c0_i32, %c0_i32_0 : i32, i32
  }
  func.func @transform_9(%arg0: i32) -> (i32, i32) {
    %c0_i32 = arith.constant 0 : i32
    %c0_i32_0 = arith.constant 0 : i32
    %c0_i32_1 = arith.constant 0 : i32
    return %c0_i32, %c0_i32_0 : i32, i32
  }
  func.func @transform_10(%arg0: i32) -> (i32, i32) {
    %c0_i32 = arith.constant 0 : i32
    %c0_i32_0 = arith.constant 0 : i32
    %c0_i32_1 = arith.constant 0 : i32
    return %c0_i32, %c0_i32_0 : i32, i32
  }
  func.func @transform_11(%arg0: i32) -> (i32, i32) {
    %c0_i32 = arith.constant 0 : i32
    %c0_i32_0 = arith.constant 0 : i32
    %c0_i32_1 = arith.constant 0 : i32
    return %c0_i32, %c0_i32_0 : i32, i32
  }
  func.func @transform_12(%arg0: i32) -> (i32, i32) {
    %c0_i32 = arith.constant 0 : i32
    %c0_i32_0 = arith.constant 0 : i32
    %c0_i32_1 = arith.constant 0 : i32
    return %c0_i32, %c0_i32_0 : i32, i32
  }
  func.func @transform_13(%arg0: i32) -> (i32, i32) {
    %c0_i32 = arith.constant 0 : i32
    %c0_i32_0 = arith.constant 0 : i32
    %c0_i32_1 = arith.constant 0 : i32
    return %c0_i32, %c0_i32_0 : i32, i32
  }
  func.func @transform_14(%arg0: i32) -> (i32, i32) {
    %c0_i32 = arith.constant 0 : i32
    %c0_i32_0 = arith.constant 0 : i32
    %c0_i32_1 = arith.constant 0 : i32
    return %c0_i32, %c0_i32_0 : i32, i32
  }
  func.func @transform_15(%arg0: i32) -> (i32, i32) {
    %c0_i32 = arith.constant 0 : i32
    %c0_i32_0 = arith.constant 0 : i32
    %c0_i32_1 = arith.constant 0 : i32
    return %c0_i32, %c0_i32_0 : i32, i32
  }
  func.func @transform_16(%arg0: i32) -> (i32, i32) {
    %c0_i32 = arith.constant 0 : i32
    %c0_i32_0 = arith.constant 0 : i32
    %c0_i32_1 = arith.constant 0 : i32
    return %c0_i32, %c0_i32_0 : i32, i32
  }
  func.func @transform_17(%arg0: i32) -> (i32, i32) {
    %c0_i32 = arith.constant 0 : i32
    %c0_i32_0 = arith.constant 0 : i32
    %c0_i32_1 = arith.constant 0 : i32
    return %c0_i32, %c0_i32_0 : i32, i32
  }
  func.func @transform_18(%arg0: i32) -> (i32, i32) {
    %c0_i32 = arith.constant 0 : i32
    %c0_i32_0 = arith.constant 0 : i32
    %c0_i32_1 = arith.constant 0 : i32
    return %c0_i32, %c0_i32_0 : i32, i32
  }
  func.func @transform_19(%arg0: i32) -> (i32, i32) {
    %c0_i32 = arith.constant 0 : i32
    %c0_i32_0 = arith.constant 0 : i32
    %c0_i32_1 = arith.constant 0 : i32
    return %c0_i32, %c0_i32_0 : i32, i32
  }
  func.func @transform_20(%arg0: i32) -> (i32, i32) {
    %c0_i32 = arith.constant 0 : i32
    %c0_i32_0 = arith.constant 0 : i32
    %c0_i32_1 = arith.constant 0 : i32
    return %c0_i32, %c0_i32_0 : i32, i32
  }
  func.func @transform_21(%arg0: i32) -> (i32, i32) {
    %c0_i32 = arith.constant 0 : i32
    %c0_i32_0 = arith.constant 0 : i32
    %c0_i32_1 = arith.constant 0 : i32
    return %c0_i32, %c0_i32_0 : i32, i32
  }
  func.func @transform_22(%arg0: i32) -> (i32, i32) {
    %c0_i32 = arith.constant 0 : i32
    %c0_i32_0 = arith.constant 0 : i32
    %c0_i32_1 = arith.constant 0 : i32
    return %c0_i32, %c0_i32_0 : i32, i32
  }
  func.func @transform_23(%arg0: i32) -> (i32, i32) {
    %c0_i32 = arith.constant 0 : i32
    %c0_i32_0 = arith.constant 0 : i32
    %c0_i32_1 = arith.constant 0 : i32
    return %c0_i32, %c0_i32_0 : i32, i32
  }
  func.func @transform_24(%arg0: i32) -> (i32, i32) {
    %c0_i32 = arith.constant 0 : i32
    %c0_i32_0 = arith.constant 0 : i32
    %c0_i32_1 = arith.constant 0 : i32
    return %c0_i32, %c0_i32_0 : i32, i32
  }
  func.func @transform_25(%arg0: i32) -> (i32, i32) {
    %c0_i32 = arith.constant 0 : i32
    %c0_i32_0 = arith.constant 0 : i32
    %c0_i32_1 = arith.constant 0 : i32
    return %c0_i32, %c0_i32_0 : i32, i32
  }
}

</mosaic_0001>

<bundles_post_ra>
// kernel: tpu_custom_call.1
= control target key start
LH: loop header
LB: loop body
LE: loop exit
PB: predicated region body
PF: predicated region fallthrough
CT: control target
= control target key end

     0   :  { %s1185_s0 = inlined_call_operand.vmem [shape: f32[4,32], index: 0, kind: input, shape index: {}]   ;;  %s1186_s1 = inlined_call_operand.vmem [shape: f32[4,1], index: 1, kind: input, shape index: {}]   ;;  %s1187_s2 = inlined_call_operand.vmem [shape: f32[4,1], index: 2, kind: input, shape index: {}]   ;;  %s1188_s3 = inlined_call_operand.vmem [shape: f32[8,4], index: 3, kind: input, shape index: {}]   ;;  %s1189_s4 = inlined_call_operand.vmem [shape: f32[8,1], index: 4, kind: input, shape index: {}]   ;;  %s1190_s5 = inlined_call_operand.vmem [shape: f32[8,1], index: 5, kind: input, shape index: {}]   ;;  %s1191_s6 = inlined_call_operand.vmem [shape: f32[8,1], index: 6, kind: input, shape index: {}]   ;;  %s1192_s7 = inlined_call_operand.vmem [shape: f32[4,24], index: 7, kind: input, shape index: {}]   ;;  %s1193_s8 = inlined_call_operand.vmem [shape: f32[4,1], index: 8, kind: input, shape index: {}]   ;;  %s1194_s9 = inlined_call_operand.vmem [shape: f32[8,1], index: 9, kind: input, shape index: {}]   ;;  %s1195_s10 = inlined_call_operand.vmem [shape: f32[8,1], index: 10, kind: input, shape index: {}]   ;;  %s1196_s11 = inlined_call_operand.vmem [shape: f32[8,8], index: 11, kind: input, shape index: {}]   ;;  %s1197_s12 = inlined_call_operand.vmem [shape: f32[8,1], index: 12, kind: input, shape index: {}]   ;;  %s1198_s13 = inlined_call_operand.vmem [shape: f32[8,1], index: 13, kind: input, shape index: {}]   ;;  %s1199_s14 = inlined_call_operand.vmem [shape: f32[8,1], index: 14, kind: input, shape index: {}]   ;;  %s1200_s15 = inlined_call_operand.vmem [shape: f32[4,24], index: 15, kind: input, shape index: {}]   ;;  %s1201_s16 = inlined_call_operand.vmem [shape: f32[4,1], index: 16, kind: input, shape index: {}]   ;;  %s1202_s17 = inlined_call_operand.vmem [shape: f32[12,1], index: 17, kind: input, shape index: {}]   ;;  %s1203_s18 = inlined_call_operand.vmem [shape: f32[12,1], index: 18, kind: input, shape index: {}]   ;;  %s1204_s19 = inlined_call_operand.vmem [shape: f32[8,12], index: 19, kind: input, shape index: {}]   ;;  %s1205_s20 = inlined_call_operand.vmem [shape: f32[8,1], index: 20, kind: input, shape index: {}]   ;;  %s1206_s21 = inlined_call_operand.vmem [shape: f32[8,1], index: 21, kind: input, shape index: {}]   ;;  %s1207_s22 = inlined_call_operand.vmem [shape: f32[8,1], index: 22, kind: input, shape index: {}]   ;;  %s1208_s23 = inlined_call_operand.vmem [shape: f32[4,24], index: 23, kind: input, shape index: {}]   ;;  %s1209_s24 = inlined_call_operand.vmem [shape: f32[4,1], index: 24, kind: input, shape index: {}]   ;;  %s1210_s25 = inlined_call_operand.hbm [shape: f32[16,32], index: 25, kind: output, shape index: {}]  }
   0x1   :  { %1211 = sst [smem:[#allocation6_spill]] %s1185_s0 }
   0x2   :  { %1212 = sst [smem:[#allocation7_spill]] %s1186_s1 }
   0x3   :  { %1213 = sst [smem:[#allocation8_spill]] %s1187_s2 }
   0x4   :  { %1214 = sst [smem:[#allocation9_spill]] %s1188_s3 }
   0x5   :  { %1215 = sst [smem:[#allocation10_spill]] %s1189_s4 }
   0x6   :  { %1216 = sst [smem:[#allocation11_spill]] %s1190_s5 }
   0x7   :  { %1217 = sst [smem:[#allocation12_spill]] %s1191_s6 }
   0x8   :  { %1218 = sst [smem:[#allocation13_spill]] %s1192_s7 }
   0x9   :  { %1219 = sst [smem:[#allocation14_spill]] %s1193_s8 }
   0xa   :  { %1220 = sst [smem:[#allocation15_spill]] %s1194_s9 }
   0xb   :  { %s1221_s6 = sld [smem:[#allocation7_spill]]  ;;  %v880_v1 = vmov 0   ;;  %vm98_vm0 = vcmask 257024  }
   0xc   :  { %856 = vset.pattern.permute.xlu0 %v880_v1  ;;  %s1222_s3 = sld [smem:[#allocation6_spill]]  ;;  %857 = vset.pattern.permute.xlu1 %v880_v1 }
  0x11   :  { %v102_v0 = vld [vmem:[%s1221_s6] sm:$0xf] }
  0x12   :  { %v97_v2 = vld [vmem:[%s1222_s3] sm:$0xf] }
  0x13   :  { %30 = vsyncpa [#allocation4], 0  ;;  %105 = vperm.xlu0 %856, %v102_v0   ;;  %99 = vst.msk [vmem:[#allocation2] sm:$0xf] %vm98_vm0, %v97_v2  ;;  %s1223_s8 = sld [smem:[#allocation8_spill]]  ;;  %v881_v4 = vmov 0.0   ;;  %v81_v34 = vlaneseq }
  0x14   :  { %803 = vmatprep.subr.mxu0 %v881_v4  ;;  %808 = vmatprep.subr.mxu1 %v881_v4  ;;  %vm882_vm1 = vmmov 0   ;;  %s1224_s28 = sld [smem:[#allocation10_spill]]  ;;  %vm127_vm2 = vcmask 1043456   ;;  %vm123_vm3 = vcmask 31744   ;;  %s883_s26 = smov 32   ;;  %vm216_vm4 = vcmask 1047808  }
  0x15   :  { %805 = vmatprep.mubr.msk.f32.mxu0 %vm882_vm1, %v881_v4  ;;  %814 = vmatprep.mubr.msk.f32.mxu1 %vm882_vm1, %v881_v4  ;;  %s1225_s0 = sld [smem:[#allocation12_spill]]  ;;  %s884_s1 = smov 97   ;;  %v331_v30 = vld [vmem:[%s1197_s12] sm:$0xff]  ;;  %v82_v35 = vand.u32 127, %v81_v34  ;;  %vm239_vm7 = vcmask 195584   ;;  %vm751_vm8 = vcmask 261120  }
  0x16   :  { %s1226_s6 = sld [smem:[#allocation11_spill]]  ;;  %v323_v31 = vld [vmem:[%s1195_s10] sm:$0xff]  ;;  %vm337_vm9 = vcmask 64512   ;;  %v527_v2 = vld [vmem:[%s1202_s17 + $0x8] sm:$0xf]  ;;  %vm561_vm10 = vcmask 97280  }
  0x17   :  { %s1227_s3 = sld [smem:[#allocation9_spill]]  ;;  %v419_v32 = vld [vmem:[%s1199_s14] sm:$0xff]  ;;  %v87_v36 = vand.u32 15, %v82_v35 }
  0x18   :  { %v412_v33 = vld [vmem:[%s1198_s13] sm:$0xff]  ;;  %s1234_s13 = sld [smem:[#allocation13_spill]] }
  0x19   :  { %v109_v3 = vld [vmem:[%s1223_s8] sm:$0xf]  ;;  %s885_s8 = smov 127   ;;  %vm1075_vm5 = vcmp.lt.s32.totalorder %v87_v36, 15  ;;  %vm1082_vm6 = vcmp.ge.s32.totalorder %v87_v36, 1 }
  0x1a   :  { %v117_v5 = vld [vmem:[%s1224_s28] sm:$0xff]  ;;  %112 = vperm.xlu0 %856, %v109_v3   ;;  %s1228_s28 = sld [smem:[#allocation15_spill]] }
  0x1b   :  { %120 = vperm.xlu1 %857, %v117_v5   ;;  %v209_v6 = vld [vmem:[%s1225_s0] sm:$0xff]  ;;  %s1229_s0 = sld [smem:[#allocation14_spill]]  ;;  %v541_v5 = vld [vmem:[%s1203_s18 + $0x8] sm:$0xf] }
  0x1c   :  { %v202_v7 = vld [vmem:[%s1226_s6] sm:$0xff] }
  0x1d   :  { %v100_v8 = vld [vmem:[#allocation2] sm:$0xf] }
  0x1e   :  { %212 = vperm.xlu0 %856, %v209_v6   ;;  %v101_v9 = vmax.f32 %v100_v8, 0.0  ;;  %v116_v14 = vld [vmem:[%s1227_s3] sm:$0xff] }
  0x1f   :  { %205 = vperm.xlu1 %857, %v202_v7   ;;  %v232_v40 = vld [vmem:[%s1234_s13] sm:$0xf] }
  0x20   :  { %v316_v28 = vld [vmem:[%s1228_s28] sm:$0xff] }
  0x21   :  { %v233_v29 = vld [vmem:[%s1229_s0] sm:$0xf] }
  0x22   :  { %v330_v52 = vld [vmem:[%s1196_s11] sm:$0xff] }
  0x23   :  { %v442_v3 = vld [vmem:[%s1201_s16] sm:$0xf] }
  0x24   :  { %v526_v6 = vld [vmem:[%s1202_s17] sm:$0xff] }
  0x25   :  { %v555_v7 = vld [vmem:[%s1205_s20] sm:$0xff] }
  0x26   :  { %v540_v8 = vld [vmem:[%s1203_s18] sm:$0xff] }
  0x8e   :  { %v106_v10 = vpop.permute.xlu0 %105 }
  0x8f   :  { %v108_v11 = vmul.f32 %v106_v10, %v101_v9  ;;  %v646_v9 = vld [vmem:[%s1207_s22] sm:$0xff] }
  0x90   :  { %v639_v10 = vld [vmem:[%s1206_s21] sm:$0xff] }
  0x95   :  { %v113_v12 = vpop.permute.xlu0 %112 }
  0x96   :  { %v115_v13 = vadd.f32 %v113_v12, %v108_v11  ;;  %v121_v15 = vpop.permute.xlu1 %120  ;;  %v441_v12 = vld [vmem:[%s1200_s15] sm:$0xf] }
  0x98   :  { %804 = vmatpush3.msk.msra.mxu0 %vm127_vm2, %v115_v13 }
  0x99   :  { %806 = vmatmul.mubr.msk.f32.vlgmr.msra.gmra.mxu0 %vm123_vm3, %v116_v14  ;;  %817 = vmatprep.subr.mxu0 %v881_v4  ;;  %v213_v22 = vpop.permute.xlu0 %212 }
  0x9a   :  { %819 = vmatprep.mubr.msk.f32.mxu0 %vm882_vm1, %v881_v4  ;;  %v206_v20 = vpop.permute.xlu1 %205 }
 0x159   :  { %v197_v16 = vpop.f32.mrf.mxu0 }
 0x15a   :  { %v198_v17 = vadd.f32 %v197_v16, %v121_v15 }
 0x15b   :  { %v807_v18 = vpop.f32.mrf.mxu0 }
 0x15c   :  { %v201_v19 = vmax.f32 %v198_v17, 0.0 }
 0x15e   :  { %v208_v21 = vmul.f32 %v206_v20, %v201_v19 }
 0x160   :  { %v215_v23 = vadd.f32 %v213_v22, %v208_v21 }
 0x162   :  { %217 = vrot.lane.b32.xlu1 %v215_v23, %s883_s26 }
 0x1d4   :  { %v218_v24 = vpop.permute.xlu1 %217 }
 0x1d5   :  { %v219_v25 = vsel %vm216_vm4, %v218_v24, %v215_v23 }
 0x1d6   :  { %220 = vrot.lane.b32.xlu0 %v219_v25, %s883_s26 }
 0x248   :  { %v221_v26 = vpop.permute.xlu0 %220 }
 0x249   :  { %v222_v27 = vsel %vm216_vm4, %v221_v26, %v215_v23 }
 0x24a   :  { %224 = vrot.lane.b32.xlu0 %v222_v27, %s884_s1  ;;  %228 = vrot.lane.b32.xlu1 %v222_v27, %s885_s8 }
 0x24e   :  { %319 = vperm.xlu0 %856, %v316_v28   ;;  %236 = vperm.xlu1 %857, %v233_v29   ;;  %v554_v28 = vld [vmem:[%s1204_s19] sm:$0xff] }
 0x252   :  { %334 = vperm.xlu0 %856, %v331_v30   ;;  %326 = vperm.xlu1 %857, %v323_v31  }
 0x256   :  { %422 = vperm.xlu0 %856, %v419_v32   ;;  %415 = vperm.xlu1 %857, %v412_v33  }
 0x2bc   :  { %v229_v38 = vpop.permute.xlu1 %228  ;;  %v225_v41 = vpop.permute.xlu0 %224 }
 0x2bd   :  { %809 = vmatpush3.msk.msra.mxu1 %vm1075_vm5, %v229_v38 }
 0x2be   :  { %810 = vmatprep.subr.mxu1 %v881_v4 }
 0x2bf   :  { %811 = vmatpush3.msra.mxu1 %v215_v23 }
 0x2c0   :  { %812 = vmatprep.subr.mxu1 %v881_v4 }
 0x2c1   :  { %813 = vmatpush3.msk.msra.mxu1 %vm1082_vm6, %v225_v41 }
 0x2c2   :  { %815 = vmatmul.mubr.msk.f32.vlgmr.msra.gmra.mxu1 %vm239_vm7, %v232_v40  ;;  %831 = vmatprep.subr.mxu1 %v881_v4 }
 0x2c3   :  { %835 = vmatprep.mubr.msk.f32.mxu1 %vm882_vm1, %v881_v4 }
 0x2c9   :  { %v237_v42 = vpop.permute.xlu1 %236  ;;  %v320_v48 = vpop.permute.xlu0 %319 }
 0x2cd   :  { %v327_v50 = vpop.permute.xlu1 %326  ;;  %v335_v53 = vpop.permute.xlu0 %334 }
 0x2d1   :  { %v416_v58 = vpop.permute.xlu1 %415  ;;  %v423_v60 = vpop.permute.xlu0 %422 }
 0x382   :  { %v309_v43 = vpop.f32.mrf.mxu1 }
 0x383   :  { %v310_v44 = vadd.f32 %v309_v43, %v237_v42 }
 0x384   :  { %v816_v45 = vpop.f32.mrf.mxu1 }
 0x385   :  { %313 = vst.msk [vmem:[#allocation2 + $0x4] sm:$0xf] %vm98_vm0, %v310_v44  ;;  %v669_v44 = vld [vmem:[%s1209_s24] sm:$0xf]  ;;  %s886_s24 = smov [#allocation3]  }
 0x38c   :  { %v1097_v46 = vld [vmem:[#allocation2] sm:$0xff] }
 0x38d   :  { %v315_v47 = vmax.f32 %v1097_v46, 0.0  ;;  %752 = vst.msk [vmem:[#allocation3] sm:$0xff] %vm751_vm8, %v1097_v46  ;;  %v668_v46 = vld [vmem:[%s1208_s23] sm:$0xf] }
 0x38f   :  { %v322_v49 = vmul.f32 %v320_v48, %v315_v47 }
 0x391   :  { %v329_v51 = vadd.f32 %v327_v50, %v322_v49 }
 0x393   :  { %818 = vmatpush3.msra.mxu0 %v329_v51 }
 0x394   :  { %820 = vmatmul.mubr.msk.f32.vlgmr.msra.gmra.mxu0 %vm337_vm9, %v330_v52  ;;  %822 = vmatprep.subr.mxu0 %v881_v4 }
 0x395   :  { %828 = vmatprep.mubr.msk.f32.mxu0 %vm882_vm1, %v881_v4 }
 0x454   :  { %v407_v54 = vpop.f32.mrf.mxu0 }
 0x455   :  { %v408_v55 = vadd.f32 %v407_v54, %v335_v53 }
 0x456   :  { %v821_v56 = vpop.f32.mrf.mxu0 }
 0x457   :  { %v411_v57 = vmax.f32 %v408_v55, 0.0 }
 0x459   :  { %v418_v59 = vmul.f32 %v416_v58, %v411_v57 }
 0x45b   :  { %v425_v61 = vadd.f32 %v423_v60, %v418_v59 }
 0x45d   :  { %426 = vrot.lane.b32.xlu1 %v425_v61, %s883_s26 }
 0x4cf   :  { %v427_v62 = vpop.permute.xlu1 %426 }
 0x4d0   :  { %v428_v63 = vsel %vm216_vm4, %v427_v62, %v425_v61 }
 0x4d1   :  { %429 = vrot.lane.b32.xlu0 %v428_v63, %s883_s26 }
 0x543   :  { %v430_v0 = vpop.permute.xlu0 %429 }
 0x544   :  { %v431_v1 = vsel %vm216_vm4, %v430_v0, %v425_v61 }
 0x545   :  { %433 = vrot.lane.b32.xlu0 %v431_v1, %s884_s1  ;;  %437 = vrot.lane.b32.xlu1 %v431_v1, %s885_s8 }
 0x549   :  { %535 = vperm.xlu0 %856, %v527_v2   ;;  %445 = vperm.xlu1 %857, %v442_v3  }
 0x54d   :  { %549 = vperm.xlu0 %856, %v541_v5   ;;  %530 = vperm.xlu1 %857, %v526_v6  }
 0x551   :  { %558 = vperm.xlu0 %856, %v555_v7   ;;  %544 = vperm.xlu1 %857, %v540_v8  }
 0x555   :  { %649 = vperm.xlu0 %856, %v646_v9   ;;  %642 = vperm.xlu1 %857, %v639_v10  }
 0x5b7   :  { %v438_v11 = vpop.permute.xlu1 %437  ;;  %v434_v13 = vpop.permute.xlu0 %433 }
 0x5b8   :  { %823 = vmatpush3.msk.msra.mxu0 %vm1075_vm5, %v438_v11 }
 0x5b9   :  { %824 = vmatprep.subr.mxu0 %v881_v4 }
 0x5ba   :  { %825 = vmatpush3.msra.mxu0 %v425_v61 }
 0x5bb   :  { %826 = vmatprep.subr.mxu0 %v881_v4 }
 0x5bc   :  { %827 = vmatpush3.msk.msra.mxu0 %vm1082_vm6, %v434_v13 }
 0x5bd   :  { %829 = vmatmul.mubr.msk.f32.vlgmr.msra.gmra.mxu0 %vm239_vm7, %v441_v12 }
 0x5c4   :  { %v446_v14 = vpop.permute.xlu1 %445  ;;  %v536_v18 = vpop.permute.xlu0 %535 }
 0x5c8   :  { %v531_v19 = vpop.permute.xlu1 %530  ;;  %v550_v23 = vpop.permute.xlu0 %549 }
 0x5c9   :  { %v538_v25 = vmul.f32 %v531_v19, %v315_v47 }
 0x5cc   :  { %v545_v24 = vpop.permute.xlu1 %544  ;;  %v559_v29 = vpop.permute.xlu0 %558 }
 0x5cd   :  { %v552_v27 = vadd.f32 %v545_v24, %v538_v25 }
 0x5d0   :  { %v643_v34 = vpop.permute.xlu1 %642  ;;  %v650_v36 = vpop.permute.xlu0 %649 }
 0x67d   :  { %v517_v15 = vpop.f32.mrf.mxu0 }
 0x67e   :  { %v518_v16 = vadd.f32 %v517_v15, %v446_v14 }
 0x67f   :  { %v830_v17 = vpop.f32.mrf.mxu0 }
 0x680   :  { %521 = vst.msk [vmem:[#allocation2 + $0x8] sm:$0xf] %vm98_vm0, %v518_v16 }
 0x687   :  { %v523_v20 = vld [vmem:[#allocation2 + $0x8] sm:$0xf] }
 0x688   :  { %v525_v21 = vmax.f32 %v523_v20, 0.0 }
 0x68a   :  { %v539_v22 = vmul.f32 %v536_v18, %v525_v21 }
 0x68c   :  { %v553_v26 = vadd.f32 %v550_v23, %v539_v22 }
 0x68e   :  { %832 = vmatpush3.msk.msra.mxu1 %vm127_vm2, %v553_v26 }
 0x68f   :  { %833 = vmatprep.subr.mxu1 %v881_v4 }
 0x690   :  { %834 = vmatpush3.msra.mxu1 %v552_v27 }
 0x691   :  { %836 = vmatmul.mubr.msk.f32.vlgmr.msra.gmra.mxu1 %vm561_vm10, %v554_v28  ;;  %838 = vmatprep.subr.mxu1 %v881_v4 }
 0x692   :  { %844 = vmatprep.mubr.msk.f32.mxu1 %vm882_vm1, %v881_v4 }
 0x751   :  { %v634_v30 = vpop.f32.mrf.mxu1 }
 0x752   :  { %v635_v31 = vadd.f32 %v634_v30, %v559_v29 }
 0x753   :  { %v837_v32 = vpop.f32.mrf.mxu1 }
 0x754   :  { %v638_v33 = vmax.f32 %v635_v31, 0.0 }
 0x756   :  { %v645_v35 = vmul.f32 %v643_v34, %v638_v33 }
 0x758   :  { %v652_v38 = vadd.f32 %v650_v36, %v645_v35 }
 0x75a   :  { %653 = vrot.lane.b32.xlu1 %v652_v38, %s883_s26 }
 0x7cc   :  { %v654_v40 = vpop.permute.xlu1 %653 }
 0x7cd   :  { %v655_v41 = vsel %vm216_vm4, %v654_v40, %v652_v38 }
 0x7ce   :  { %656 = vrot.lane.b32.xlu0 %v655_v41, %s883_s26 }
 0x840   :  { %v657_v42 = vpop.permute.xlu0 %656 }
 0x841   :  { %v658_v43 = vsel %vm216_vm4, %v657_v42, %v652_v38 }
 0x842   :  { %660 = vrot.lane.b32.xlu0 %v658_v43, %s884_s1  ;;  %664 = vrot.lane.b32.xlu1 %v658_v43, %s885_s8  ;;  %s759_s1 = sshll.u32 %s886_s24, 4  ;;  %s760_s1 = int_to_ptr.vmem [resolvable:$true] %s759_s1 }
 0x843   :  { %s858_s23 = scalar_lea.vmem %s760_s1, 256  ;;  %p863_p1 = scmp.lt.s32.totalorder %s760_s1, %s760_s1 }
 0x844   :  { %p859_p0 = scmp.ne.s32.totalorder %s760_s1, %s858_s23  ;;  %p864_p2 = scmp.lt.s32.totalorder %s858_s23, %s858_s23 }
 0x846   :  { %672 = vperm.xlu1 %857, %v669_v44   ;;  %p865_p3 = por %p864_p2, %p863_p1 }
 0x848   :  { %p866_p4 = pnand %p865_p3, %p859_p0 }
 0x8b4   :  { %v665_v45 = vpop.permute.xlu1 %664  ;;  %v661_v47 = vpop.permute.xlu0 %660 }
 0x8b5   :  { %839 = vmatpush3.msk.msra.mxu1 %vm1075_vm5, %v665_v45 }
 0x8b6   :  { %840 = vmatprep.subr.mxu1 %v881_v4 }
 0x8b7   :  { %841 = vmatpush3.msra.mxu1 %v652_v38 }
 0x8b8   :  { %842 = vmatprep.subr.mxu1 %v881_v4 }
 0x8b9   :  { %843 = vmatpush3.msk.msra.mxu1 %vm1082_vm6, %v661_v47 }
 0x8ba   :  { %845 = vmatmul.mubr.msk.f32.vlgmr.msra.gmra.mxu1 %vm239_vm7, %v668_v46 }
 0x8c1   :  { %v673_v48 = vpop.permute.xlu1 %672 }
 0x97a   :  { %v744_v49 = vpop.f32.mrf.mxu1 }
 0x97b   :  { %v745_v50 = vadd.f32 %v744_v49, %v673_v48 }
 0x97c   :  { %v846_v37 = vpop.f32.mrf.mxu1 }
 0x97d   :  { %748 = vst.msk [vmem:[#allocation2 + $0xc] sm:$0xf] %vm98_vm0, %v745_v50 }
 0x984   :  { %v750_v51 = vld [vmem:[#allocation2 + $0x8] sm:$0xff] }
 0x985   :  { %753 = vst.msk [vmem:[#allocation3 + $0x8] sm:$0xff] %vm751_vm8, %v750_v51 }
 0x986   :  { %869 = shalt.err (!%p866_p4)
}
 0x987   :  { %s887_s8 = smov 128   ;;  %s888_s14 = smov 8  }
 0x988   :  { %765 = dma.vmem_to_hbm [thread:$0]  %s760_s1, 256, %s1210_s25, [#allocation4], %s887_s8, %s887_s8, %s888_s14  }
 0x989   :  { %878 = dma.done.wait [#allocation4], 256  }
 0x98a   :  { %879 = vsyncadd [#allocation4], 4294967040 }
 0x98b   :  { %769 = vsyncpa [#allocation4], 1 }

</bundles_post_ra>
